<compile_context>
chip_gen: v5e
topology: v5e:2x2
jax: 0.10.0
libtpu: 0.0.40
codegen_flags: <defaults>
</compile_context>

<pallas_src>
import functools
import math

import jax
import jax.numpy as jnp
from jax.experimental import pallas as pl
from jax.experimental.pallas import tpu as pltpu


# ----------------------------------------------------------------------------
# helpers
# ----------------------------------------------------------------------------
def _round_up(x, m):
    return ((x + m - 1) // m) * m


@functools.lru_cache(maxsize=None)
def _vmem_limit_bytes():
    # ~3/4 of physical VMEM, capped at 96 MiB:
    #   v5e/v6e (128 MiB) -> 96 MiB, v7x (64 MiB per TC) -> 48 MiB.
    try:
        cap = int(pltpu.get_tpu_info().vmem_capacity_bytes)
        return min((cap * 3) // 4, 96 * 1024 * 1024)
    except Exception:
        return 48 * 1024 * 1024  # safe on every generation


def _tile_for(padded, cap, align):
    """Largest multiple of `align` that divides `padded` and is <= cap."""
    t = max(align, min(cap, padded))
    t = (t // align) * align
    while padded % t:
        t -= align
    return t


# Fallback tile caps (only used when the fused path does not fit in VMEM).
# Double-buffered worst case (~3 MiB) is far below the scoped limit on every
# generation.  On v7x, tn <= 512 still yields >= 2 N-tiles for wide layers,
# so the "parallel" grid axes can be sharded across both TensorCores.
_TM_MAX = 256
_TN_MAX = 512
_TK_MAX = 512


# ----------------------------------------------------------------------------
# One-time parameter packing (pad + bf16 cast, done once outside jit)
# ----------------------------------------------------------------------------
def pack_params(params):
    """Pad every layer to (128-multiple) dims, cast weights to bf16.

    Returns (packed, dims):
      packed: list of (w_padded bf16 (Kp,Np), b_padded f32 (1,Np))
      dims:   static tuple of (K, N) per layer (for slicing outputs).
    """
    packed = []
    dims = []
    for p in params:
        K, N = p["w"].shape
        Kp, Np = _round_up(K, 128), _round_up(N, 128)
        w = jnp.pad(p["w"], ((0, Kp - K), (0, Np - N))).astype(jnp.bfloat16)
        b = jnp.pad(p["b"], (0, Np - N)).reshape(1, Np).astype(jnp.float32)
        packed.append((w, b))
        dims.append((K, N))
    return packed, tuple(dims)


def _fused_vmem_bytes(mp, packed):
    """Rough VMEM footprint of the fully fused kernel (no double buffering)."""
    total = mp * packed[0][0].shape[0] * 2  # input activation (bf16)
    for w, b in packed:
        kp, np_ = w.shape
        total += kp * np_ * 2 + np_ * 4          # weight (bf16) + bias (f32)
        total += mp * np_ * (4 + 2)               # f32 result + bf16 chain copy
    return total


# ----------------------------------------------------------------------------
# Fused whole-network kernel (single pallas_call, no grid, VMEM-resident)
# ----------------------------------------------------------------------------
def _fused_mlp_kernel(*refs, n_layers):
    # refs = [x, w0, b0, ..., w_{L-1}, b_{L-1}, logits, feat_0, ..., feat_{L-2}]
    x_ref = refs[0]
    w_refs = [refs[1 + 2 * i] for i in range(n_layers)]
    b_refs = [refs[2 + 2 * i] for i in range(n_layers)]
    out_start = 1 + 2 * n_layers
    logits_ref = refs[out_start]
    feat_refs = refs[out_start + 1:]

    h = x_ref[...]  # bf16 (Mp, Kp0)
    for i in range(n_layers):
        y = jnp.dot(h, w_refs[i][...], preferred_element_type=jnp.float32)
        y = y + b_refs[i][...]
        if i < n_layers - 1:
            y = jnp.maximum(y, 0.0)
            feat_refs[i][...] = y          # feature_list entry (f32)
            h = y.astype(jnp.bfloat16)     # chain in bf16 for the next MXU pass
        else:
            logits_ref[...] = y


def _mlp_forward_fused(packed, xp, dims, m):
    n_layers = len(packed)
    mp = xp.shape[0]

    out_shapes = [jax.ShapeDtypeStruct((mp, packed[-1][0].shape[1]), jnp.float32)]
    for i in range(n_layers - 1):
        out_shapes.append(
            jax.ShapeDtypeStruct((mp, packed[i][0].shape[1]), jnp.float32)
        )

    inputs = [xp]
    for w, b in packed:
        inputs += [w, b]

    vmem_spec = pl.BlockSpec(memory_space=pltpu.MemorySpace.VMEM)
    outs = pl.pallas_call(
        functools.partial(_fused_mlp_kernel, n_layers=n_layers),
        out_shape=tuple(out_shapes),
        in_specs=[vmem_spec] * len(inputs),
        out_specs=tuple(vmem_spec for _ in out_shapes),
        compiler_params=pltpu.CompilerParams(
            vmem_limit_bytes=_vmem_limit_bytes(),
        ),
    )(*inputs)

    logits = outs[0][:m, : dims[-1][1]]
    feats = [outs[1 + i][:m, : dims[i][1]] for i in range(n_layers - 1)]
    return logits, feats


# ----------------------------------------------------------------------------
# Fallback: per-layer tiled dense kernel (for weights too large for VMEM)
# ----------------------------------------------------------------------------
def _dense_kernel_reduce(x_ref, w_ref, b_ref, o_ref, *, relu):
    # K-reduction: accumulate directly into the resident f32 output block.
    @pl.when(pl.program_id(2) == 0)
    def _():
        o_ref[...] = jnp.zeros_like(o_ref)

    o_ref[...] += jnp.dot(x_ref[...], w_ref[...], preferred_element_type=jnp.float32)

    @pl.when(pl.program_id(2) == pl.num_programs(2) - 1)
    def _():
        y = o_ref[...] + b_ref[...]
        if relu:
            y = jnp.maximum(y, 0.0)
        o_ref[...] = y


def _dense_kernel_single(x_ref, w_ref, b_ref, o_ref, *, relu):
    # Degenerate K grid: no init/finalize scaffolding.
    y = jnp.dot(x_ref[...], w_ref[...], preferred_element_type=jnp.float32)
    y = y + b_ref[...]
    if relu:
        y = jnp.maximum(y, 0.0)
    o_ref[...] = y


def _dense_padded(xp, wp, bp, *, relu):
    """Padded bf16 x (Mp,Kp) @ padded bf16 w (Kp,Np) + f32 b (1,Np) -> padded f32."""
    mp, kp = xp.shape
    kp2, np_ = wp.shape
    assert kp == kp2 and bp.shape == (1, np_)

    tm = _tile_for(mp, _TM_MAX, 16)
    tn = _tile_for(np_, _TN_MAX, 128)
    tk = _tile_for(kp, _TK_MAX, 128)
    nk = kp // tk
    grid = (mp // tm, np_ // tn, nk)

    body = _dense_kernel_reduce if nk > 1 else _dense_kernel_single
    return pl.pallas_call(
        functools.partial(body, relu=relu),
        out_shape=jax.ShapeDtypeStruct((mp, np_), jnp.float32),
        grid=grid,
        in_specs=[
            pl.BlockSpec((tm, tk), lambda i, j, k: (i, k)),
            pl.BlockSpec((tk, tn), lambda i, j, k: (k, j)),
            pl.BlockSpec((1, tn), lambda i, j, k: (0, j)),
        ],
        out_specs=pl.BlockSpec((tm, tn), lambda i, j, k: (i, j)),
        compiler_params=pltpu.CompilerParams(
            dimension_semantics=("parallel", "parallel", "arbitrary"),
            vmem_limit_bytes=_vmem_limit_bytes(),
        ),
    )(xp, wp, bp)


def _mlp_forward_tiled(packed, xp, dims, m):
    n_layers = len(packed)
    feats = []
    h = xp
    logits = None
    for i, (w, b) in enumerate(packed):
        relu = i < n_layers - 1
        out = _dense_padded(h, w, b, relu=relu)  # padded f32
        if relu:
            feats.append(out[:m, : dims[i][1]])
            h = out.astype(jnp.bfloat16)         # keep padded/bf16 between layers
        else:
            logits = out[:m, : dims[i][1]]
    return logits, feats


# ----------------------------------------------------------------------------
# MLP forward (matches MLP.forward: returns (logits, feature_list))
# ----------------------------------------------------------------------------
def mlp_forward(packed, x, dims):
    """packed: output of pack_params; x: (M, in_dim) f32; dims: static tuple."""
    m, k0 = x.shape
    assert k0 == dims[0][0]
    mp = _round_up(m, 16)                        # bf16 sublane packing
    kp0 = packed[0][0].shape[0]
    xp = jnp.pad(x, ((0, mp - m), (0, kp0 - k0))).astype(jnp.bfloat16)

    if _fused_vmem_bytes(mp, packed) <= int(0.6 * _vmem_limit_bytes()):
        return _mlp_forward_fused(packed, xp, dims, m)
    return _mlp_forward_tiled(packed, xp, dims, m)


def _reference_forward(params, x):
    """Plain-JAX reference with the same bf16-input / f32-accumulate policy."""

    def d(h, p, relu):
        y = (
            jnp.dot(
                h.astype(jnp.bfloat16),
                p["w"].astype(jnp.bfloat16),
                preferred_element_type=jnp.float32,
            )
            + p["b"]
        )
        return jnp.maximum(y, 0.0) if relu else y

    feats = []
    out = d(x, params[0], True)
    feats.append(out)
    for idx in range(1, len(params) - 1):
        out = d(out, params[idx], True)
        feats.append(out)
    return d(out, params[-1], False), feats


# ----------------------------------------------------------------------------
# Deterministic parameter init (matching DenseLayer's init recipe)
# ----------------------------------------------------------------------------
def init_params(key, in_dim, num_features, num_outputs):
    dims = [in_dim] + list(num_features) + [num_outputs]
    nonlins = ["relu"] * len(num_features) + ["linear"]
    params = []
    keys = jax.random.split(key, len(nonlins))
    for k, fan_in, fan_out, nl in zip(keys, dims[:-1], dims[1:], nonlins):
        # kaiming_uniform_: bound = gain * sqrt(3 / fan_in), gain = sqrt(2) for relu
        gain = math.sqrt(2.0) if nl == "relu" else 1.0
        bound = gain * math.sqrt(3.0 / fan_in)
        # stored as (in, out) so the kernel computes x @ w directly
        w = jax.random.uniform(k, (fan_in, fan_out), jnp.float32, -bound, bound)
        b = jnp.zeros((fan_out,), jnp.float32)  # fc.bias.data.fill_(0.)
        params.append({"w": w, "b": b})
    return params


if __name__ == "__main__":
    key = jax.random.PRNGKey(0)
    pkey, xkey = jax.random.split(key)

    batch = 8
    in_dim = 512
    num_features = [256, 256, 256]
    num_outputs = 10

    params = init_params(pkey, in_dim, num_features, num_outputs)
    x = jax.random.normal(xkey, (batch, in_dim), jnp.float32)

    # One-time bf16 packing of weights/biases (outside jit, no per-call recast).
    packed, dims = pack_params(params)

    fwd = jax.jit(mlp_forward, static_argnames="dims")
    logits, feats = fwd(packed, x, dims=dims)
    jax.block_until_ready(logits)
    for f in feats:
        jax.block_until_ready(f)

    # forward-pass semantics of MLP.forward
    assert logits.shape == (batch, num_outputs)
    assert len(feats) == len(num_features)
    for f, nf in zip(feats, num_features):
        assert f.shape == (batch, nf)

    # numerical sanity check against a plain-JAX reference (same bf16 policy)
    ref_logits, ref_feats = _reference_forward(params, x)
    assert jnp.allclose(logits, ref_logits, rtol=2e-2, atol=2e-2)
    for f, rf in zip(feats, ref_feats):
        assert jnp.allclose(f, rf, rtol=2e-2, atol=2e-2)

    print("KERNEL_OK")
</pallas_src>

<mosaic_0001>
module attributes {stable_mosaic.version = 11 : i64} {
  func.func @_fused_mlp_kernel(%arg0: memref<16x512xbf16, #tpu.memory_space<vmem>>, %arg1: memref<512x256xbf16, #tpu.memory_space<vmem>>, %arg2: memref<1x256xf32, #tpu.memory_space<vmem>>, %arg3: memref<256x256xbf16, #tpu.memory_space<vmem>>, %arg4: memref<1x256xf32, #tpu.memory_space<vmem>>, %arg5: memref<256x256xbf16, #tpu.memory_space<vmem>>, %arg6: memref<1x256xf32, #tpu.memory_space<vmem>>, %arg7: memref<256x128xbf16, #tpu.memory_space<vmem>>, %arg8: memref<1x128xf32, #tpu.memory_space<vmem>>, %arg9: memref<16x128xf32, #tpu.memory_space<vmem>>, %arg10: memref<16x256xf32, #tpu.memory_space<vmem>>, %arg11: memref<16x256xf32, #tpu.memory_space<vmem>>, %arg12: memref<16x256xf32, #tpu.memory_space<vmem>>) attributes {dimension_semantics = [], scalar_prefetch = 0 : i64, scratch_operands = 0 : i64, tpu.core_type = #tpu.core_type<tc>} {
    %c0 = arith.constant 0 : index
    %c0_0 = arith.constant 0 : index
    %0 = vector.load %arg0[%c0, %c0_0] : memref<16x512xbf16, #tpu.memory_space<vmem>>, vector<16x512xbf16>
    %c0_1 = arith.constant 0 : index
    %c0_2 = arith.constant 0 : index
    %1 = vector.load %arg1[%c0_1, %c0_2] : memref<512x256xbf16, #tpu.memory_space<vmem>>, vector<512x256xbf16>
    %cst = arith.constant dense<0.000000e+00> : vector<16x256xf32>
    %2 = tpu.matmul %0, %1, %cst {dimension_numbers = #tpu.dot_dimension_numbers<[1], [0], [0], [1], [0, 0, 1, 1], [], []>} : vector<16x512xbf16>, vector<512x256xbf16>, vector<16x256xf32> -> vector<16x256xf32>
    %c0_3 = arith.constant 0 : index
    %c0_4 = arith.constant 0 : index
    %3 = vector.load %arg2[%c0_3, %c0_4] : memref<1x256xf32, #tpu.memory_space<vmem>>, vector<1x256xf32>
    %4 = vector.broadcast %3 : vector<1x256xf32> to vector<16x256xf32>
    %5 = arith.addf %2, %4 : vector<16x256xf32>
    %cst_5 = arith.constant 0.000000e+00 : f32
    %6 = vector.broadcast %cst_5 : f32 to vector<16x256xf32>
    %7 = arith.maximumf %5, %6 : vector<16x256xf32>
    %c0_6 = arith.constant 0 : index
    %c0_7 = arith.constant 0 : index
    %8 = vector.load %arg10[%c0_6, %c0_7] : memref<16x256xf32, #tpu.memory_space<vmem>>, vector<16x256xf32>
    tpu.vector_store %arg10[%c0_6, %c0_7], %7 {strides = array<i32>} : memref<16x256xf32, #tpu.memory_space<vmem>>, vector<16x256xf32>,
    %9 = arith.truncf %7 : vector<16x256xf32> to vector<16x256xbf16>
    %c0_8 = arith.constant 0 : index
    %c0_9 = arith.constant 0 : index
    %10 = vector.load %arg3[%c0_8, %c0_9] : memref<256x256xbf16, #tpu.memory_space<vmem>>, vector<256x256xbf16>
    %cst_10 = arith.constant dense<0.000000e+00> : vector<16x256xf32>
    %11 = tpu.matmul %9, %10, %cst_10 {dimension_numbers = #tpu.dot_dimension_numbers<[1], [0], [0], [1], [0, 0, 1, 1], [], []>} : vector<16x256xbf16>, vector<256x256xbf16>, vector<16x256xf32> -> vector<16x256xf32>
    %c0_11 = arith.constant 0 : index
    %c0_12 = arith.constant 0 : index
    %12 = vector.load %arg4[%c0_11, %c0_12] : memref<1x256xf32, #tpu.memory_space<vmem>>, vector<1x256xf32>
    %13 = vector.broadcast %12 : vector<1x256xf32> to vector<16x256xf32>
    %14 = arith.addf %11, %13 : vector<16x256xf32>
    %cst_13 = arith.constant 0.000000e+00 : f32
    %15 = vector.broadcast %cst_13 : f32 to vector<16x256xf32>
    %16 = arith.maximumf %14, %15 : vector<16x256xf32>
    %c0_14 = arith.constant 0 : index
    %c0_15 = arith.constant 0 : index
    %17 = vector.load %arg11[%c0_14, %c0_15] : memref<16x256xf32, #tpu.memory_space<vmem>>, vector<16x256xf32>
    tpu.vector_store %arg11[%c0_14, %c0_15], %16 {strides = array<i32>} : memref<16x256xf32, #tpu.memory_space<vmem>>, vector<16x256xf32>,
    %18 = arith.truncf %16 : vector<16x256xf32> to vector<16x256xbf16>
    %c0_16 = arith.constant 0 : index
    %c0_17 = arith.constant 0 : index
    %19 = vector.load %arg5[%c0_16, %c0_17] : memref<256x256xbf16, #tpu.memory_space<vmem>>, vector<256x256xbf16>
    %cst_18 = arith.constant dense<0.000000e+00> : vector<16x256xf32>
    %20 = tpu.matmul %18, %19, %cst_18 {dimension_numbers = #tpu.dot_dimension_numbers<[1], [0], [0], [1], [0, 0, 1, 1], [], []>} : vector<16x256xbf16>, vector<256x256xbf16>, vector<16x256xf32> -> vector<16x256xf32>
    %c0_19 = arith.constant 0 : index
    %c0_20 = arith.constant 0 : index
    %21 = vector.load %arg6[%c0_19, %c0_20] : memref<1x256xf32, #tpu.memory_space<vmem>>, vector<1x256xf32>
    %22 = vector.broadcast %21 : vector<1x256xf32> to vector<16x256xf32>
    %23 = arith.addf %20, %22 : vector<16x256xf32>
    %cst_21 = arith.constant 0.000000e+00 : f32
    %24 = vector.broadcast %cst_21 : f32 to vector<16x256xf32>
    %25 = arith.maximumf %23, %24 : vector<16x256xf32>
    %c0_22 = arith.constant 0 : index
    %c0_23 = arith.constant 0 : index
    %26 = vector.load %arg12[%c0_22, %c0_23] : memref<16x256xf32, #tpu.memory_space<vmem>>, vector<16x256xf32>
    tpu.vector_store %arg12[%c0_22, %c0_23], %25 {strides = array<i32>} : memref<16x256xf32, #tpu.memory_space<vmem>>, vector<16x256xf32>,
    %27 = arith.truncf %25 : vector<16x256xf32> to vector<16x256xbf16>
    %c0_24 = arith.constant 0 : index
    %c0_25 = arith.constant 0 : index
    %28 = vector.load %arg7[%c0_24, %c0_25] : memref<256x128xbf16, #tpu.memory_space<vmem>>, vector<256x128xbf16>
    %cst_26 = arith.constant dense<0.000000e+00> : vector<16x128xf32>
    %29 = tpu.matmul %27, %28, %cst_26 {dimension_numbers = #tpu.dot_dimension_numbers<[1], [0], [0], [1], [0, 0, 1, 1], [], []>} : vector<16x256xbf16>, vector<256x128xbf16>, vector<16x128xf32> -> vector<16x128xf32>
    %c0_27 = arith.constant 0 : index
    %c0_28 = arith.constant 0 : index
    %30 = vector.load %arg8[%c0_27, %c0_28] : memref<1x128xf32, #tpu.memory_space<vmem>>, vector<1x128xf32>
    %31 = vector.broadcast %30 : vector<1x128xf32> to vector<16x128xf32>
    %32 = arith.addf %29, %31 : vector<16x128xf32>
    %c0_29 = arith.constant 0 : index
    %c0_30 = arith.constant 0 : index
    %33 = vector.load %arg9[%c0_29, %c0_30] : memref<16x128xf32, #tpu.memory_space<vmem>>, vector<16x128xf32>
    tpu.vector_store %arg9[%c0_29, %c0_30], %32 {strides = array<i32>} : memref<16x128xf32, #tpu.memory_space<vmem>>, vector<16x128xf32>,
    return
  }
}

</mosaic_0001>

<bundles_post_ra>
// kernel: mlp_forward.1
= control target key start
LH: loop header
LB: loop body
LE: loop exit
PB: predicated region body
PF: predicated region fallthrough
CT: control target
= control target key end

     0   :  { %18 = vsyncpa [#allocation3], 0  ;;  %s2378_s0 = inlined_call_operand.vmem [shape: bf16[16,512], index: 0, kind: input, shape index: {}]   ;;  %s2379_s1 = inlined_call_operand.hbm [shape: bf16[512,256], index: 1, kind: input, shape index: {}]   ;;  %s2380_s2 = inlined_call_operand.vmem [shape: f32[1,256], index: 2, kind: input, shape index: {}]   ;;  %s2381_s3 = inlined_call_operand.hbm [shape: bf16[256,256], index: 3, kind: input, shape index: {}]   ;;  %s2382_s4 = inlined_call_operand.vmem [shape: f32[1,256], index: 4, kind: input, shape index: {}]   ;;  %s2383_s5 = inlined_call_operand.hbm [shape: bf16[256,256], index: 5, kind: input, shape index: {}]   ;;  %s2384_s6 = inlined_call_operand.vmem [shape: f32[1,256], index: 6, kind: input, shape index: {}]   ;;  %s2385_s7 = inlined_call_operand.hbm [shape: bf16[256,128], index: 7, kind: input, shape index: {}]   ;;  %s2386_s8 = inlined_call_operand.vmem [shape: f32[1,128], index: 8, kind: input, shape index: {}]   ;;  %s2387_s9 = inlined_call_operand.vmem [shape: f32[16,128], index: 9, kind: output, shape index: {0}]   ;;  %s2388_s10 = inlined_call_operand.vmem [shape: f32[16,256], index: 10, kind: output, shape index: {1}]   ;;  %s2389_s11 = inlined_call_operand.vmem [shape: f32[16,256], index: 11, kind: output, shape index: {2}]   ;;  %s2390_s12 = inlined_call_operand.vmem [shape: f32[16,256], index: 12, kind: output, shape index: {3}]  }
   0x1   :  { %19 = vsyncpa [#allocation5], 0 }
   0x2   :  { %20 = vsyncpa [#allocation8], 0  ;;  %s42_s23 = sshll.u32 %s2381_s3, 4  ;;  %s2195_s24 = smov [#allocation4]   ;;  %s43_s23 = int_to_ptr.hbm [resolvable:$true] %s42_s23 }
   0x3   :  { %s44_s25 = sshll.u32 %s2195_s24, 4  ;;  %s27_s28 = sshll.u32 %s2379_s1, 4  ;;  %s45_s25 = int_to_ptr.vmem [resolvable:$true] %s44_s25  ;;  %s28_s28 = int_to_ptr.hbm [resolvable:$true] %s27_s28 }
   0x4   :  { %s2196_s29 = smov 128   ;;  %s2197_s30 = smov 8  }
   0x5   :  { %50 = dma.hbm_to_vmem [thread:$0]  %s43_s23, 4096, %s45_s25, [#allocation5], %s2196_s29, %s2196_s29, %s2197_s30  }
   0x6   :  { %s2198_s13 = smov [#allocation2]   ;;  %s57_s17 = sshll.u32 %s2383_s5, 4  ;;  %s58_s17 = int_to_ptr.hbm [resolvable:$true] %s57_s17 }
   0x7   :  { %s29_s14 = sshll.u32 %s2198_s13, 4  ;;  %s72_s19 = sshll.u32 %s2385_s7, 4  ;;  %s30_s14 = int_to_ptr.vmem [resolvable:$true] %s29_s14  ;;  %s73_s19 = int_to_ptr.hbm [resolvable:$true] %s72_s19 }
   0x8   :  { %35 = dma.hbm_to_vmem [thread:$0]  %s28_s28, 8192, %s30_s14, [#allocation3], %s2196_s29, %s2196_s29, %s2197_s30  }
   0x9   :  { %s2199_s20 = smov [#allocation6]   ;;  %s2200_s1 = smov [#allocation7]  }
   0xa   :  { %s59_s21 = sshll.u32 %s2199_s20, 4  ;;  %s74_s22 = sshll.u32 %s2200_s1, 4  ;;  %s60_s21 = int_to_ptr.vmem [resolvable:$true] %s59_s21  ;;  %s75_s22 = int_to_ptr.vmem [resolvable:$true] %s74_s22 }
   0xb   :  { %65 = dma.hbm_to_vmem [thread:$0]  %s58_s17, 4096, %s60_s21, [#allocation5], %s2196_s29, %s2196_s29, %s2197_s30  }
   0xc   :  { %s2201_s23 = smov 64   ;;  %s2202_s24 = smov 4  }
   0xd   :  { %80 = dma.hbm_to_vmem [thread:$0]  %s73_s19, 2048, %s75_s22, [#allocation8], %s2201_s23, %s2201_s23, %s2202_s24  }
   0xe   :  { %2189 = dma.done.wait [#allocation3], 8192  }
   0xf   :  { %2190 = vsyncadd [#allocation3], 4294959104 }
  0x10   :  { %2191 = dma.done.wait [#allocation5], 8192  }
  0x11   :  { %2192 = vsyncadd [#allocation5], 4294959104 }
  0x12   :  { %2193 = dma.done.wait [#allocation8], 2048  }
  0x13   :  { %2194 = vsyncadd [#allocation8], 4294965248  ;;  %v1418_v0 = vld [vmem:[#allocation2 + $0x70] sm:$0xf]  ;;  %v1955_v1 = vld [vmem:[#allocation2 + $0x74] sm:$0xf0] }
  0x14   :  { %v1482_v2 = vld [vmem:[#allocation2 + $0xf0] sm:$0xf]  ;;  %v1419_v3 = vor.u32 %v1955_v1, %v1418_v0  ;;  %v1971_v4 = vld [vmem:[#allocation2 + $0xf4] sm:$0xf0]  ;;  %v1410_v11 = vld [vmem:[#allocation2 + $0x60] sm:$0xf] }
  0x15   :  { %v1546_v5 = vld [vmem:[#allocation2 + $0x170] sm:$0xf]  ;;  %v1987_v6 = vld [vmem:[#allocation2 + $0x174] sm:$0xf0]  ;;  %v1483_v7 = vor.u32 %v1971_v4, %v1482_v2  ;;  %v1953_v13 = vld [vmem:[#allocation2 + $0x64] sm:$0xf0] }
  0x16   :  { %v1547_v8 = vor.u32 %v1987_v6, %v1546_v5  ;;  %v1610_v9 = vld [vmem:[#allocation2 + $0x1f0] sm:$0xf]  ;;  %v2003_v10 = vld [vmem:[#allocation2 + $0x1f4] sm:$0xf0]  ;;  %513 = vmatpush.bf16.msra.mxu0 %v1419_v3  ;;  %v1474_v14 = vld [vmem:[#allocation2 + $0xe0] sm:$0xf]  ;;  %v1411_v16 = vor.u32 %v1953_v13, %v1410_v11 }
  0x17   :  { %v1611_v12 = vor.u32 %v2003_v10, %v1610_v9  ;;  %v1969_v15 = vld [vmem:[#allocation2 + $0xe4] sm:$0xf0]  ;;  %527 = vmatpush.bf16.msra.mxu1 %v1483_v7  ;;  %v1538_v18 = vld [vmem:[#allocation2 + $0x160] sm:$0xf]  ;;  %v1402_v23 = vld [vmem:[#allocation2 + $0x50] sm:$0xf] }
  0x18   :  { %541 = vmatpush.bf16.msra.mxu2 %v1547_v8  ;;  %v1475_v17 = vor.u32 %v1969_v15, %v1474_v14  ;;  %v1985_v19 = vld [vmem:[#allocation2 + $0x164] sm:$0xf0]  ;;  %v1602_v20 = vld [vmem:[#allocation2 + $0x1e0] sm:$0xf]  ;;  %v1951_v24 = vld [vmem:[#allocation2 + $0x54] sm:$0xf0] }
  0x19   :  { %555 = vmatpush.bf16.msra.mxu3 %v1611_v12  ;;  %v1539_v21 = vor.u32 %v1985_v19, %v1538_v18  ;;  %v2001_v22 = vld [vmem:[#allocation2 + $0x1e4] sm:$0xf0]  ;;  %v1466_v26 = vld [vmem:[#allocation2 + $0xd0] sm:$0xf]  ;;  %v1967_v27 = vld [vmem:[#allocation2 + $0xd4] sm:$0xf0]  ;;  %v1403_v29 = vor.u32 %v1951_v24, %v1402_v23 }
  0x1a   :  { %v1603_v25 = vor.u32 %v2001_v22, %v1602_v20  ;;  %v1530_v28 = vld [vmem:[#allocation2 + $0x150] sm:$0xf]  ;;  %514 = vmatpush.bf16.msra.mxu0 %v1411_v16  ;;  %v1983_v30 = vld [vmem:[#allocation2 + $0x154] sm:$0xf0]  ;;  %v1467_v33 = vor.u32 %v1967_v27, %v1466_v26  ;;  %v1394_v35 = vld [vmem:[#allocation2 + $0x40] sm:$0xf] }
  0x1b   :  { %v1594_v31 = vld [vmem:[#allocation2 + $0x1d0] sm:$0xf]  ;;  %v1999_v32 = vld [vmem:[#allocation2 + $0x1d4] sm:$0xf0]  ;;  %528 = vmatpush.bf16.msra.mxu1 %v1475_v17  ;;  %v1531_v34 = vor.u32 %v1983_v30, %v1530_v28  ;;  %v1949_v36 = vld [vmem:[#allocation2 + $0x44] sm:$0xf0] }
  0x1c   :  { %542 = vmatpush.bf16.msra.mxu2 %v1539_v21  ;;  %v1458_v37 = vld [vmem:[#allocation2 + $0xc0] sm:$0xf]  ;;  %v1595_v38 = vor.u32 %v1999_v32, %v1594_v31  ;;  %v1965_v39 = vld [vmem:[#allocation2 + $0xc4] sm:$0xf0]  ;;  %v1395_v44 = vor.u32 %v1949_v36, %v1394_v35  ;;  %v1386_v47 = vld [vmem:[#allocation2 + $0x30] sm:$0xf] }
  0x1d   :  { %556 = vmatpush.bf16.msra.mxu3 %v1603_v25  ;;  %v1522_v40 = vld [vmem:[#allocation2 + $0x140] sm:$0xf]  ;;  %v1981_v41 = vld [vmem:[#allocation2 + $0x144] sm:$0xf0]  ;;  %v1459_v45 = vor.u32 %v1965_v39, %v1458_v37  ;;  %v1947_v48 = vld [vmem:[#allocation2 + $0x34] sm:$0xf0] }
  0x1e   :  { %v1586_v42 = vld [vmem:[#allocation2 + $0x1c0] sm:$0xf]  ;;  %v1997_v43 = vld [vmem:[#allocation2 + $0x1c4] sm:$0xf0]  ;;  %515 = vmatpush.bf16.msra.mxu0 %v1403_v29  ;;  %v1523_v46 = vor.u32 %v1981_v41, %v1522_v40  ;;  %v1450_v49 = vld [vmem:[#allocation2 + $0xb0] sm:$0xf]  ;;  %v1387_v56 = vor.u32 %v1947_v48, %v1386_v47 }
  0x1f   :  { %529 = vmatpush.bf16.msra.mxu1 %v1467_v33  ;;  %v1587_v50 = vor.u32 %v1997_v43, %v1586_v42  ;;  %v1963_v51 = vld [vmem:[#allocation2 + $0xb4] sm:$0xf0]  ;;  %v1514_v52 = vld [vmem:[#allocation2 + $0x130] sm:$0xf]  ;;  %v1378_v59 = vld [vmem:[#allocation2 + $0x20] sm:$0xf] }
  0x20   :  { %543 = vmatpush.bf16.msra.mxu2 %v1531_v34  ;;  %v1979_v53 = vld [vmem:[#allocation2 + $0x134] sm:$0xf0]  ;;  %v1578_v54 = vld [vmem:[#allocation2 + $0x1b0] sm:$0xf]  ;;  %v1451_v57 = vor.u32 %v1963_v51, %v1450_v49  ;;  %v1945_v60 = vld [vmem:[#allocation2 + $0x24] sm:$0xf0] }
  0x21   :  { %557 = vmatpush.bf16.msra.mxu3 %v1595_v38  ;;  %v1995_v55 = vld [vmem:[#allocation2 + $0x1b4] sm:$0xf0]  ;;  %v1515_v58 = vor.u32 %v1979_v53, %v1514_v52  ;;  %v1442_v61 = vld [vmem:[#allocation2 + $0xa0] sm:$0xf]  ;;  %v1961_v63 = vld [vmem:[#allocation2 + $0xa4] sm:$0xf0]  ;;  %v1379_v4 = vor.u32 %v1945_v60, %v1378_v59 }
  0x22   :  { %516 = vmatpush.bf16.msra.mxu0 %v1395_v44  ;;  %v1579_v62 = vor.u32 %v1995_v55, %v1578_v54  ;;  %v1506_v0 = vld [vmem:[#allocation2 + $0x120] sm:$0xf]  ;;  %v1977_v1 = vld [vmem:[#allocation2 + $0x124] sm:$0xf0]  ;;  %v1370_v5 = vld [vmem:[#allocation2 + $0x10] sm:$0xf]  ;;  %v1443_v6 = vor.u32 %v1961_v63, %v1442_v61 }
  0x23   :  { %530 = vmatpush.bf16.msra.mxu1 %v1459_v45  ;;  %v1570_v2 = vld [vmem:[#allocation2 + $0x1a0] sm:$0xf]  ;;  %v1993_v3 = vld [vmem:[#allocation2 + $0x1a4] sm:$0xf0]  ;;  %v1507_v7 = vor.u32 %v1977_v1, %v1506_v0  ;;  %v1943_v8 = vld [vmem:[#allocation2 + $0x14] sm:$0xf0] }
  0x24   :  { %544 = vmatpush.bf16.msra.mxu2 %v1523_v46  ;;  %v1434_v9 = vld [vmem:[#allocation2 + $0x90] sm:$0xf]  ;;  %v1959_v10 = vld [vmem:[#allocation2 + $0x94] sm:$0xf0]  ;;  %v1571_v11 = vor.u32 %v1993_v3, %v1570_v2  ;;  %v1362_v16 = vld [vmem:[#allocation2] sm:$0xf]  ;;  %v1371_v18 = vor.u32 %v1943_v8, %v1370_v5 }
  0x25   :  { %558 = vmatpush.bf16.msra.mxu3 %v1587_v50  ;;  %v1498_v12 = vld [vmem:[#allocation2 + $0x110] sm:$0xf]  ;;  %v1975_v13 = vld [vmem:[#allocation2 + $0x114] sm:$0xf0]  ;;  %v1941_v17 = vld [vmem:[#allocation2 + $0x4] sm:$0xf0]  ;;  %v1435_v23 = vor.u32 %v1959_v10, %v1434_v9 }
  0x26   :  { %517 = vmatpush.bf16.msra.mxu0 %v1387_v56  ;;  %v1562_v14 = vld [vmem:[#allocation2 + $0x190] sm:$0xf]  ;;  %v1991_v15 = vld [vmem:[#allocation2 + $0x194] sm:$0xf0]  ;;  %v1426_v19 = vld [vmem:[#allocation2 + $0x80] sm:$0xf]  ;;  %v1499_v24 = vor.u32 %v1975_v13, %v1498_v12  ;;  %v1363_v35 = vor.u32 %v1941_v17, %v1362_v16 }
  0x27   :  { %531 = vmatpush.bf16.msra.mxu1 %v1451_v57  ;;  %v1957_v20 = vld [vmem:[#allocation2 + $0x84] sm:$0xf0]  ;;  %v1490_v21 = vld [vmem:[#allocation2 + $0x100] sm:$0xf]  ;;  %v1954_v27 = vld [vmem:[#allocation2 + $0x74] sm:$0xf]  ;;  %v1563_v28 = vor.u32 %v1991_v15, %v1562_v14 }
  0x28   :  { %545 = vmatpush.bf16.msra.mxu2 %v1515_v58  ;;  %v1973_v22 = vld [vmem:[#allocation2 + $0x104] sm:$0xf0]  ;;  %v1554_v25 = vld [vmem:[#allocation2 + $0x180] sm:$0xf]  ;;  %v1420_v29 = vld [vmem:[#allocation2 + $0x78] sm:$0xf0]  ;;  %v1427_v39 = vor.u32 %v1957_v20, %v1426_v19 }
  0x29   :  { %559 = vmatpush.bf16.msra.mxu3 %v1579_v62  ;;  %v1989_v26 = vld [vmem:[#allocation2 + $0x184] sm:$0xf0]  ;;  %v1970_v30 = vld [vmem:[#allocation2 + $0xf4] sm:$0xf]  ;;  %v1484_v31 = vld [vmem:[#allocation2 + $0xf8] sm:$0xf0]  ;;  %v1491_v40 = vor.u32 %v1973_v22, %v1490_v21  ;;  %v1423_v45 = vor.u32 %v1954_v27, %v1420_v29 }
  0x2a   :  { %518 = vmatpush.bf16.msra.mxu0 %v1379_v4  ;;  %v1986_v32 = vld [vmem:[#allocation2 + $0x174] sm:$0xf]  ;;  %v1548_v33 = vld [vmem:[#allocation2 + $0x178] sm:$0xf0]  ;;  %v1354_v37 = vld [vmem:[%s2378_s0 + $0x8] sm:$0xf]  ;;  %v1555_v44 = vor.u32 %v1989_v26, %v1554_v25  ;;  %v1487_v49 = vor.u32 %v1970_v30, %v1484_v31 }
  0x2b   :  { %532 = vmatpush.bf16.msra.mxu1 %v1443_v6  ;;  %v2002_v34 = vld [vmem:[#allocation2 + $0x1f4] sm:$0xf]  ;;  %v1612_v36 = vld [vmem:[#allocation2 + $0x1f8] sm:$0xf0]  ;;  %v1939_v38 = vld [vmem:[%s2378_s0 + $0x14] sm:$0xf0]  ;;  %v1551_v50 = vor.u32 %v1986_v32, %v1548_v33 }
  0x2c   :  { %546 = vmatpush.bf16.msra.mxu2 %v1507_v7  ;;  %v1346_v41 = vld [vmem:[%s2378_s0] sm:$0xf]  ;;  %v1938_v42 = vld [vmem:[%s2378_s0 + $0xc] sm:$0xf0]  ;;  %v1937_v43 = vld [vmem:[%s2378_s0 + $0xc] sm:$0xf]  ;;  %v1615_v54 = vor.u32 %v2002_v34, %v1612_v36  ;;  %v2304_v55 = vor.u32 %v1939_v38, %v1354_v37 }
  0x2d   :  { %560 = vmatpush.bf16.msra.mxu3 %v1571_v11  ;;  %v1356_v46 = vld [vmem:[%s2378_s0 + $0x18] sm:$0xf0]  ;;  %v1952_v47 = vld [vmem:[#allocation2 + $0x64] sm:$0xf]  ;;  %v1412_v48 = vld [vmem:[#allocation2 + $0x68] sm:$0xf0]  ;;  %v2306_v59 = vor.u32 %v1938_v42, %v1346_v41 }
  0x2e   :  { %519 = vmatpush.bf16.msra.mxu0 %v1371_v18  ;;  %v1968_v51 = vld [vmem:[#allocation2 + $0xe4] sm:$0xf]  ;;  %v1348_v53 = vld [vmem:[%s2378_s0 + $0x10] sm:$0xf0]  ;;  %v1476_v56 = vld [vmem:[#allocation2 + $0xe8] sm:$0xf0]  ;;  %v2308_v60 = vor.u32 %v1937_v43, %v1356_v46  ;;  %v1415_v63 = vor.u32 %v1952_v47, %v1412_v48 }
  0x2f   :  { %533 = vmatpush.bf16.msra.mxu1 %v1435_v23  ;;  %v1936_v52 = vld [vmem:[%s2378_s0 + $0x4] sm:$0xf]  ;;  %v1540_v58 = vld [vmem:[#allocation2 + $0x168] sm:$0xf0]  ;;  %v1479_v1 = vor.u32 %v1968_v51, %v1476_v56  ;;  %v1950_v3 = vld [vmem:[#allocation2 + $0x54] sm:$0xf] }
  0x30   :  { %547 = vmatpush.bf16.msra.mxu2 %v1499_v24  ;;  %v1984_v57 = vld [vmem:[#allocation2 + $0x164] sm:$0xf]  ;;  %v1604_v62 = vld [vmem:[#allocation2 + $0x1e8] sm:$0xf0]  ;;  %v2310_v0 = vor.u32 %v1936_v52, %v1348_v53  ;;  %v1404_v4 = vld [vmem:[#allocation2 + $0x58] sm:$0xf0] }
  0x31   :  { %561 = vmatpush.bf16.msra.mxu3 %v1563_v28  ;;  %v2000_v61 = vld [vmem:[#allocation2 + $0x1e4] sm:$0xf]  ;;  %v1543_v2 = vor.u32 %v1984_v57, %v1540_v58  ;;  %v1966_v5 = vld [vmem:[#allocation2 + $0xd4] sm:$0xf]  ;;  %v1468_v7 = vld [vmem:[#allocation2 + $0xd8] sm:$0xf0]  ;;  %v1407_v12 = vor.u32 %v1950_v3, %v1404_v4 }
  0x32   :  { %520 = vmatpush.bf16.msra.mxu0 %v1363_v35  ;;  %v1607_v6 = vor.u32 %v2000_v61, %v1604_v62  ;;  %v1982_v8 = vld [vmem:[#allocation2 + $0x154] sm:$0xf]  ;;  %v1532_v9 = vld [vmem:[#allocation2 + $0x158] sm:$0xf0]  ;;  %v1471_v13 = vor.u32 %v1966_v5, %v1468_v7  ;;  %v1948_v15 = vld [vmem:[#allocation2 + $0x44] sm:$0xf] }
  0x33   :  { %534 = vmatpush.bf16.msra.mxu1 %v1427_v39  ;;  %v1998_v10 = vld [vmem:[#allocation2 + $0x1d4] sm:$0xf]  ;;  %v1596_v11 = vld [vmem:[#allocation2 + $0x1d8] sm:$0xf0]  ;;  %v1535_v14 = vor.u32 %v1982_v8, %v1532_v9  ;;  %v1396_v16 = vld [vmem:[#allocation2 + $0x48] sm:$0xf0] }
  0x34   :  { %548 = vmatpush.bf16.msra.mxu2 %v1491_v40  ;;  %v1964_v17 = vld [vmem:[#allocation2 + $0xc4] sm:$0xf]  ;;  %v1599_v18 = vor.u32 %v1998_v10, %v1596_v11  ;;  %v1460_v19 = vld [vmem:[#allocation2 + $0xc8] sm:$0xf0]  ;;  %v1399_v24 = vor.u32 %v1948_v15, %v1396_v16  ;;  %v1946_v27 = vld [vmem:[#allocation2 + $0x34] sm:$0xf] }
  0x35   :  { %562 = vmatpush.bf16.msra.mxu3 %v1555_v44  ;;  %521 = vmatmul.bf16.vlgmr.msra.gmra.mxu0 %v2306_v59  ;;  %v1980_v20 = vld [vmem:[#allocation2 + $0x144] sm:$0xf]  ;;  %v1524_v21 = vld [vmem:[#allocation2 + $0x148] sm:$0xf0]  ;;  %v1463_v25 = vor.u32 %v1964_v17, %v1460_v19  ;;  %v1388_v28 = vld [vmem:[#allocation2 + $0x38] sm:$0xf0] }
  0x36   :  { %569 = vmatpush.bf16.msrb.mxu0 %v1423_v45  ;;  %535 = vmatmul.bf16.vlgmr.msra.gmra.mxu1 %v2310_v0  ;;  %v1996_v22 = vld [vmem:[#allocation2 + $0x1c4] sm:$0xf]  ;;  %v1588_v23 = vld [vmem:[#allocation2 + $0x1c8] sm:$0xf0]  ;;  %v1527_v26 = vor.u32 %v1980_v20, %v1524_v21  ;;  %v1962_v29 = vld [vmem:[#allocation2 + $0xb4] sm:$0xf]  ;;  %v1391_v36 = vor.u32 %v1946_v27, %v1388_v28 }
  0x37   :  { %583 = vmatpush.bf16.msrb.mxu1 %v1487_v49  ;;  %549 = vmatmul.bf16.vlgmr.msra.gmra.mxu2 %v2304_v55  ;;  %v1591_v30 = vor.u32 %v1996_v22, %v1588_v23  ;;  %v1452_v31 = vld [vmem:[#allocation2 + $0xb8] sm:$0xf0]  ;;  %v1978_v32 = vld [vmem:[#allocation2 + $0x134] sm:$0xf]  ;;  %v1944_v39 = vld [vmem:[#allocation2 + $0x24] sm:$0xf] }
  0x38   :  { %597 = vmatpush.bf16.msrb.mxu2 %v1551_v50  ;;  %563 = vmatmul.bf16.vlgmr.msra.gmra.mxu3 %v2308_v60  ;;  %v1516_v33 = vld [vmem:[#allocation2 + $0x138] sm:$0xf0]  ;;  %v1994_v34 = vld [vmem:[#allocation2 + $0x1b4] sm:$0xf]  ;;  %v1455_v37 = vor.u32 %v1962_v29, %v1452_v31  ;;  %v1380_v40 = vld [vmem:[#allocation2 + $0x28] sm:$0xf0] }
  0x39   :  { %611 = vmatpush.bf16.msrb.mxu3 %v1615_v54  ;;  %v1580_v35 = vld [vmem:[#allocation2 + $0x1b8] sm:$0xf0]  ;;  %v1519_v38 = vor.u32 %v1978_v32, %v1516_v33  ;;  %v1960_v41 = vld [vmem:[#allocation2 + $0xa4] sm:$0xf]  ;;  %v1444_v43 = vld [vmem:[#allocation2 + $0xa8] sm:$0xf0]  ;;  %v1383_v48 = vor.u32 %v1944_v39, %v1380_v40 }
  0x3a   :  { %570 = vmatpush.bf16.msrb.mxu0 %v1415_v63  ;;  %v1583_v42 = vor.u32 %v1994_v34, %v1580_v35  ;;  %v1976_v44 = vld [vmem:[#allocation2 + $0x124] sm:$0xf]  ;;  %v1508_v45 = vld [vmem:[#allocation2 + $0x128] sm:$0xf0]  ;;  %v1447_v49 = vor.u32 %v1960_v41, %v1444_v43  ;;  %v1942_v51 = vld [vmem:[#allocation2 + $0x14] sm:$0xf] }
  0x3b   :  { %584 = vmatpush.bf16.msrb.mxu1 %v1479_v1  ;;  %v1992_v46 = vld [vmem:[#allocation2 + $0x1a4] sm:$0xf]  ;;  %v1572_v47 = vld [vmem:[#allocation2 + $0x1a8] sm:$0xf0]  ;;  %v1511_v50 = vor.u32 %v1976_v44, %v1508_v45  ;;  %v1372_v52 = vld [vmem:[#allocation2 + $0x18] sm:$0xf0] }
  0x3c   :  { %598 = vmatpush.bf16.msrb.mxu2 %v1543_v2  ;;  %v1958_v53 = vld [vmem:[#allocation2 + $0x94] sm:$0xf]  ;;  %v1575_v54 = vor.u32 %v1992_v46, %v1572_v47  ;;  %v1436_v56 = vld [vmem:[#allocation2 + $0x98] sm:$0xf0]  ;;  %v1375_v63 = vor.u32 %v1942_v51, %v1372_v52  ;;  %v1940_v1 = vld [vmem:[#allocation2 + $0x4] sm:$0xf] }
  0x3d   :  { %612 = vmatpush.bf16.msrb.mxu3 %v1607_v6  ;;  %v1974_v57 = vld [vmem:[#allocation2 + $0x114] sm:$0xf]  ;;  %v1500_v58 = vld [vmem:[#allocation2 + $0x118] sm:$0xf0]  ;;  %v1439_v2 = vor.u32 %v1958_v53, %v1436_v56  ;;  %v1364_v4 = vld [vmem:[#allocation2 + $0x8] sm:$0xf0] }
  0x3e   :  { %571 = vmatpush.bf16.msrb.mxu0 %v1407_v12  ;;  %v1990_v61 = vld [vmem:[#allocation2 + $0x194] sm:$0xf]  ;;  %v1564_v62 = vld [vmem:[#allocation2 + $0x198] sm:$0xf0]  ;;  %v1503_v3 = vor.u32 %v1974_v57, %v1500_v58  ;;  %v1956_v5 = vld [vmem:[#allocation2 + $0x84] sm:$0xf] }
  0x3f   :  { %585 = vmatpush.bf16.msrb.mxu1 %v1471_v13  ;;  %v1428_v6 = vld [vmem:[#allocation2 + $0x88] sm:$0xf0]  ;;  %v1567_v7 = vor.u32 %v1990_v61, %v1564_v62  ;;  %v1972_v8 = vld [vmem:[#allocation2 + $0x104] sm:$0xf]  ;;  %v1674_v12 = vld [vmem:[#allocation4 + $0x70] sm:$0xf] }
  0x40   :  { %599 = vmatpush.bf16.msrb.mxu2 %v1535_v14  ;;  %v1492_v9 = vld [vmem:[#allocation2 + $0x108] sm:$0xf0]  ;;  %v1988_v10 = vld [vmem:[#allocation2 + $0x184] sm:$0xf]  ;;  %v2019_v13 = vld [vmem:[#allocation4 + $0x74] sm:$0xf0]  ;;  %v1367_v14 = vor.u32 %v1940_v1, %v1364_v4  ;;  %v1431_v17 = vor.u32 %v1956_v5, %v1428_v6 }
  0x41   :  { %613 = vmatpush.bf16.msrb.mxu3 %v1599_v18  ;;  %v1556_v11 = vld [vmem:[#allocation2 + $0x188] sm:$0xf0]  ;;  %v2018_v15 = vld [vmem:[#allocation4 + $0x74] sm:$0xf]  ;;  %v1676_v16 = vld [vmem:[#allocation4 + $0x78] sm:$0xf0]  ;;  %v1495_v18 = vor.u32 %v1972_v8, %v1492_v9  ;;  %v1675_v20 = vor.u32 %v2019_v13, %v1674_v12 }
  0x42   :  { %572 = vmatpush.bf16.msrb.mxu0 %v1399_v24  ;;  %v1559_v19 = vor.u32 %v1988_v10, %v1556_v11  ;;  %v1679_v21 = vor.u32 %v2018_v15, %v1676_v16  ;;  %v1666_v22 = vld [vmem:[#allocation4 + $0x60] sm:$0xf]  ;;  %v2017_v23 = vld [vmem:[#allocation4 + $0x64] sm:$0xf0]  ;;  %v2016_v24 = vld [vmem:[#allocation4 + $0x64] sm:$0xf] }
  0x43   :  { %586 = vmatpush.bf16.msrb.mxu1 %v1463_v25  ;;  %v1668_v25 = vld [vmem:[#allocation4 + $0x68] sm:$0xf0]  ;;  %v1658_v28 = vld [vmem:[#allocation4 + $0x50] sm:$0xf]  ;;  %v2015_v29 = vld [vmem:[#allocation4 + $0x54] sm:$0xf0] }
  0x44   :  { %600 = vmatpush.bf16.msrb.mxu2 %v1527_v26  ;;  %v1667_v26 = vor.u32 %v2017_v23, %v1666_v22  ;;  %v1671_v27 = vor.u32 %v2016_v24, %v1668_v25  ;;  %v1660_v31 = vld [vmem:[#allocation4 + $0x58] sm:$0xf0]  ;;  %v1659_v32 = vor.u32 %v2015_v29, %v1658_v28  ;;  %v1650_v34 = vld [vmem:[#allocation4 + $0x40] sm:$0xf]  ;;  %v2012_v35 = vld [vmem:[#allocation4 + $0x44] sm:$0xf] }
  0x45   :  { %614 = vmatpush.bf16.msrb.mxu3 %v1591_v30  ;;  %v2014_v30 = vld [vmem:[#allocation4 + $0x54] sm:$0xf]  ;;  %v1644_v41 = vld [vmem:[#allocation4 + $0x38] sm:$0xf0]  ;;  %v2009_v43 = vld [vmem:[#allocation4 + $0x24] sm:$0xf0] }
  0x46   :  { %573 = vmatpush.bf16.msrb.mxu0 %v1391_v36  ;;  %v1663_v33 = vor.u32 %v2014_v30, %v1660_v31  ;;  %v2010_v39 = vld [vmem:[#allocation4 + $0x34] sm:$0xf]  ;;  %v2008_v44 = vld [vmem:[#allocation4 + $0x24] sm:$0xf]  ;;  %v1636_v46 = vld [vmem:[#allocation4 + $0x28] sm:$0xf0] }
  0x47   :  { %587 = vmatpush.bf16.msrb.mxu1 %v1455_v37  ;;  %v1652_v37 = vld [vmem:[#allocation4 + $0x48] sm:$0xf0]  ;;  %v1639_v47 = vor.u32 %v2008_v44, %v1636_v46  ;;  %v1628_v52 = vld [vmem:[#allocation4 + $0x18] sm:$0xf0]  ;;  %v2005_v56 = vld [vmem:[#allocation4 + $0x4] sm:$0xf0] }
  0x48   :  { %601 = vmatpush.bf16.msrb.mxu2 %v1519_v38  ;;  %v1655_v38 = vor.u32 %v2012_v35, %v1652_v37  ;;  %v2004_v57 = vld [vmem:[#allocation4 + $0x4] sm:$0xf]  ;;  %v1620_v61 = vld [vmem:[#allocation4 + $0x8] sm:$0xf0]  ;;  %v1738_v62 = vld [vmem:[#allocation4 + $0xf0] sm:$0xf] }
  0x49   :  { %615 = vmatpush.bf16.msrb.mxu3 %v1583_v42  ;;  %v1634_v42 = vld [vmem:[#allocation4 + $0x20] sm:$0xf]  ;;  %v1623_v1 = vor.u32 %v2004_v57, %v1620_v61  ;;  %v1740_v4 = vld [vmem:[#allocation4 + $0xf8] sm:$0xf0]  ;;  %v2032_v8 = vld [vmem:[#allocation4 + $0xe4] sm:$0xf] }
  0x4a   :  { %574 = vmatpush.bf16.msrb.mxu0 %v1383_v48  ;;  %v1635_v45 = vor.u32 %v2009_v43, %v1634_v42  ;;  %v1626_v48 = vld [vmem:[#allocation4 + $0x10] sm:$0xf]  ;;  %v1730_v6 = vld [vmem:[#allocation4 + $0xe0] sm:$0xf]  ;;  %v1732_v10 = vld [vmem:[#allocation4 + $0xe8] sm:$0xf0] }
  0x4b   :  { %588 = vmatpush.bf16.msrb.mxu1 %v1447_v49  ;;  %v2007_v49 = vld [vmem:[#allocation4 + $0x14] sm:$0xf0]  ;;  %v1735_v11 = vor.u32 %v2032_v8, %v1732_v10  ;;  %v2323_v12 = vld [vmem:[%s2380_s2] sm:$0x3]  ;;  %v1722_v13 = vld [vmem:[#allocation4 + $0xd0] sm:$0xf] }
  0x4c   :  { %602 = vmatpush.bf16.msrb.mxu2 %v1511_v50  ;;  %v2006_v50 = vld [vmem:[#allocation4 + $0x14] sm:$0xf]  ;;  %v1627_v51 = vor.u32 %v2007_v49, %v1626_v48  ;;  %v2028_v22 = vld [vmem:[#allocation4 + $0xc4] sm:$0xf]  ;;  %v1716_v25 = vld [vmem:[#allocation4 + $0xc8] sm:$0xf0] }
  0x4d   :  { %616 = vmatpush.bf16.msrb.mxu3 %v1575_v54  ;;  %v1631_v53 = vor.u32 %v2006_v50, %v1628_v52  ;;  %v1618_v54 = vld [vmem:[#allocation4] sm:$0xf]  ;;  %v2030_v15 = vld [vmem:[#allocation4 + $0xd4] sm:$0xf]  ;;  %v1719_v28 = vor.u32 %v2028_v22, %v1716_v25  ;;  %v1706_v30 = vld [vmem:[#allocation4 + $0xb0] sm:$0xf] }
  0x4e   :  { %575 = vmatpush.bf16.msrb.mxu0 %v1375_v63  ;;  %v1619_v58 = vor.u32 %v2005_v56, %v1618_v54  ;;  %v2035_v63 = vld [vmem:[#allocation4 + $0xf4] sm:$0xf0]  ;;  %v2022_v49 = vld [vmem:[#allocation4 + $0x94] sm:$0xf]  ;;  %v1682_v57 = vld [vmem:[#allocation4 + $0x80] sm:$0xf] }
  0x4f   :  { %589 = vmatpush.bf16.msrb.mxu1 %v1439_v2  ;;  %v1739_v2 = vor.u32 %v2035_v63, %v1738_v62  ;;  %v2027_v31 = vld [vmem:[#allocation4 + $0xb4] sm:$0xf0]  ;;  %v2020_v61 = vld [vmem:[#allocation4 + $0x84] sm:$0xf]  ;;  %v1802_v25 = vld [vmem:[#allocation6 + $0x70] sm:$0xf] }
  0x50   :  { %603 = vmatpush.bf16.msrb.mxu2 %v1503_v3  ;;  %v2034_v3 = vld [vmem:[#allocation4 + $0xf4] sm:$0xf]  ;;  %v2023_v48 = vld [vmem:[#allocation4 + $0x94] sm:$0xf0] }
  0x51   :  { %617 = vmatpush.bf16.msrb.mxu3 %v1567_v7  ;;  %v1743_v5 = vor.u32 %v2034_v3, %v1740_v4  ;;  %v2033_v7 = vld [vmem:[#allocation4 + $0xe4] sm:$0xf0] }
  0x52   :  { %576 = vmatpush.bf16.msrb.mxu0 %v1367_v14  ;;  %v1731_v9 = vor.u32 %v2033_v7, %v1730_v6  ;;  %v2031_v14 = vld [vmem:[#allocation4 + $0xd4] sm:$0xf0] }
  0x53   :  { %590 = vmatpush.bf16.msrb.mxu1 %v1431_v17  ;;  %v1723_v16 = vor.u32 %v2031_v14, %v1722_v13  ;;  %v1724_v17 = vld [vmem:[#allocation4 + $0xd8] sm:$0xf0] }
  0x54   :  { %604 = vmatpush.bf16.msrb.mxu2 %v1495_v18  ;;  %v169_v18 = vperm.slane %v2323_v12, 0 }
  0x55   :  { %618 = vmatpush.bf16.msrb.mxu3 %v1559_v19  ;;  %577 = vmatmul.bf16.vlgmr.msrb.gmra.mxu0 %v2306_v59  ;;  %v2013_v59 = vld [vmem:[#allocation4 + $0x44] sm:$0xf0]  ;;  %v1727_v19 = vor.u32 %v2030_v15, %v1724_v17 }
  0x56   :  { %833 = vmatpush.bf16.msra.mxu0 %v1675_v20  ;;  %591 = vmatmul.bf16.vlgmr.msrb.gmra.mxu1 %v2310_v0  ;;  %v1651_v36 = vor.u32 %v2013_v59, %v1650_v34  ;;  %v1642_v0 = vld [vmem:[#allocation4 + $0x30] sm:$0xf]  ;;  %v1714_v20 = vld [vmem:[#allocation4 + $0xc0] sm:$0xf]  ;;  %v1708_v34 = vld [vmem:[#allocation4 + $0xb8] sm:$0xf0] }
  0x57   :  { %605 = vmatmul.bf16.vlgmr.msrb.gmra.mxu2 %v2304_v55  ;;  %v2011_v55 = vld [vmem:[#allocation4 + $0x34] sm:$0xf0]  ;;  %847 = vmatpush.bf16.msra.mxu1 %v1739_v2 }
  0x58   :  { %861 = vmatpush.bf16.msra.mxu2 %v1679_v21  ;;  %619 = vmatmul.bf16.vlgmr.msrb.gmra.mxu3 %v2308_v60  ;;  %v1643_v40 = vor.u32 %v2011_v55, %v1642_v0  ;;  %v1647_v60 = vor.u32 %v2010_v39, %v1644_v41  ;;  %v2029_v21 = vld [vmem:[#allocation4 + $0xc4] sm:$0xf0]  ;;  %v2024_v55 = vld [vmem:[#allocation4 + $0xa4] sm:$0xf] }
  0x59   :  { %875 = vmatpush.bf16.msra.mxu3 %v1743_v5  ;;  %v1715_v24 = vor.u32 %v2029_v21, %v1714_v20  ;;  %v2025_v0 = vld [vmem:[#allocation4 + $0xa4] sm:$0xf0]  ;;  %v170_v5 = vperm.slane %v2323_v12, 1 }
  0x5a   :  { %834 = vmatpush.bf16.msra.mxu0 %v1667_v26 }
  0x5b   :  { %848 = vmatpush.bf16.msra.mxu1 %v1731_v9 }
  0x5c   :  { %862 = vmatpush.bf16.msra.mxu2 %v1671_v27 }
  0x5d   :  { %876 = vmatpush.bf16.msra.mxu3 %v1735_v11 }
  0x5e   :  { %835 = vmatpush.bf16.msra.mxu0 %v1659_v32  ;;  %v2026_v32 = vld [vmem:[#allocation4 + $0xb4] sm:$0xf] }
  0x5f   :  { %849 = vmatpush.bf16.msra.mxu1 %v1723_v16  ;;  %v1711_v35 = vor.u32 %v2026_v32, %v1708_v34  ;;  %v2049_v32 = vld [vmem:[#allocation6 + $0x64] sm:$0xf0] }
  0x60   :  { %863 = vmatpush.bf16.msra.mxu2 %v1663_v33  ;;  %v1707_v33 = vor.u32 %v2027_v31, %v1706_v30  ;;  %v1794_v31 = vld [vmem:[#allocation6 + $0x60] sm:$0xf] }
  0x61   :  { %877 = vmatpush.bf16.msra.mxu3 %v1727_v19  ;;  %v1795_v34 = vor.u32 %v2049_v32, %v1794_v31  ;;  %v1756_v31 = vld [vmem:[#allocation6 + $0x18] sm:$0xf0] }
  0x62   :  { %836 = vmatpush.bf16.msra.mxu0 %v1651_v36 }
  0x63   :  { %850 = vmatpush.bf16.msra.mxu1 %v1715_v24 }
  0x64   :  { %864 = vmatpush.bf16.msra.mxu2 %v1655_v38  ;;  %v1698_v38 = vld [vmem:[#allocation4 + $0xa0] sm:$0xf] }
  0x65   :  { %878 = vmatpush.bf16.msra.mxu3 %v1719_v28  ;;  %v1699_v41 = vor.u32 %v2025_v0, %v1698_v38  ;;  %v2066_v0 = vld [vmem:[#allocation6 + $0xf4] sm:$0xf] }
  0x66   :  { %837 = vmatpush.bf16.msra.mxu0 %v1643_v40 }
  0x67   :  { %851 = vmatpush.bf16.msra.mxu1 %v1707_v33  ;;  %v2048_v33 = vld [vmem:[#allocation6 + $0x64] sm:$0xf] }
  0x68   :  { %865 = vmatpush.bf16.msra.mxu2 %v1647_v60  ;;  %v1700_v60 = vld [vmem:[#allocation4 + $0xa8] sm:$0xf0] }
  0x69   :  { %879 = vmatpush.bf16.msra.mxu3 %v1711_v35  ;;  %v1703_v44 = vor.u32 %v2024_v55, %v1700_v60  ;;  %v1866_v35 = vld [vmem:[#allocation6 + $0xf0] sm:$0xf]  ;;  %v1868_v55 = vld [vmem:[#allocation6 + $0xf8] sm:$0xf0]  ;;  %v2046_v60 = vld [vmem:[#allocation6 + $0x54] sm:$0xf] }
  0x6a   :  { %838 = vmatpush.bf16.msra.mxu0 %v1635_v45 }
  0x6b   :  { %852 = vmatpush.bf16.msra.mxu1 %v1699_v41  ;;  %v2047_v41 = vld [vmem:[#allocation6 + $0x54] sm:$0xf0] }
  0x6c   :  { %866 = vmatpush.bf16.msra.mxu2 %v1639_v47  ;;  %v1690_v47 = vld [vmem:[#allocation4 + $0x90] sm:$0xf] }
  0x6d   :  { %880 = vmatpush.bf16.msra.mxu3 %v1703_v44  ;;  %v1691_v50 = vor.u32 %v2023_v48, %v1690_v47  ;;  %v2064_v47 = vld [vmem:[#allocation6 + $0xe4] sm:$0xf] }
  0x6e   :  { %839 = vmatpush.bf16.msra.mxu0 %v1627_v51  ;;  %v1692_v51 = vld [vmem:[#allocation4 + $0x98] sm:$0xf0] }
  0x6f   :  { %853 = vmatpush.bf16.msra.mxu1 %v1691_v50  ;;  %v1778_v50 = vld [vmem:[#allocation6 + $0x40] sm:$0xf] }
  0x70   :  { %867 = vmatpush.bf16.msra.mxu2 %v1631_v53  ;;  %v1695_v53 = vor.u32 %v2022_v49, %v1692_v51  ;;  %v1860_v49 = vld [vmem:[#allocation6 + $0xe8] sm:$0xf0]  ;;  %v2045_v51 = vld [vmem:[#allocation6 + $0x44] sm:$0xf0] }
  0x72   :  { %840 = vmatpush.bf16.msra.mxu0 %v1619_v58  ;;  %881 = vmatpush.bf16.msra.mxu3 %v1695_v53  ;;  %v2021_v58 = vld [vmem:[#allocation4 + $0x84] sm:$0xf0]  ;;  %v2044_v53 = vld [vmem:[#allocation6 + $0x44] sm:$0xf] }
  0x73   :  { %v1683_v63 = vor.u32 %v2021_v58, %v1682_v57  ;;  %v1779_v57 = vor.u32 %v2045_v51, %v1778_v50  ;;  %v2063_v58 = vld [vmem:[#allocation6 + $0xd4] sm:$0xf0]  ;;  %v1812_v51 = vld [vmem:[#allocation6 + $0x88] sm:$0xf0] }
  0x74   :  { %868 = vmatpush.bf16.msra.mxu2 %v1623_v1  ;;  %v1684_v1 = vld [vmem:[#allocation4 + $0x88] sm:$0xf0] }
  0x75   :  { %v1687_v2 = vor.u32 %v2020_v61, %v1684_v1  ;;  %854 = vmatpush.bf16.msra.mxu1 %v1683_v63  ;;  %v2062_v61 = vld [vmem:[#allocation6 + $0xd4] sm:$0xf] }
  0x77   :  { %882 = vmatpush.bf16.msra.mxu3 %v1687_v2 }
  0xb2   :  { %v522_v23 = vpop.f32.mrf.mxu0 }
  0xb3   :  { %v523_v26 = vadd.f32 %v522_v23, %v169_v18  ;;  %v536_v27 = vpop.f32.mrf.mxu1 }
  0xb5   :  { %v537_v29 = vadd.f32 %v536_v27, %v523_v26  ;;  %v2051_v26 = vld [vmem:[#allocation6 + $0x74] sm:$0xf0]  ;;  %v2050_v27 = vld [vmem:[#allocation6 + $0x74] sm:$0xf] }
  0xb6   :  { %v1803_v28 = vor.u32 %v2051_v26, %v1802_v25  ;;  %v1836_v25 = vld [vmem:[#allocation6 + $0xb8] sm:$0xf0] }
  0xb8   :  { %1097 = vmatpush.bf16.msrb.mxu0 %v1803_v28  ;;  %v2039_v28 = vld [vmem:[#allocation6 + $0x14] sm:$0xf0] }
  0xba   :  { %v550_v59 = vpop.f32.mrf.mxu2  ;;  %v524_v40 = vpop.f32.mrf.mxu0 }
  0xbb   :  { %v551_v36 = vadd.f32 %v550_v59, %v537_v29  ;;  %v564_v37 = vpop.f32.mrf.mxu3  ;;  %v525_v42 = vadd.f32 %v524_v40, %v169_v18  ;;  %v538_v43 = vpop.f32.mrf.mxu1  ;;  %v1804_v29 = vld [vmem:[#allocation6 + $0x78] sm:$0xf0]  ;;  %v1796_v59 = vld [vmem:[#allocation6 + $0x68] sm:$0xf0]  ;;  %v1871_v40 = vor.u32 %v2066_v0, %v1868_v55  ;;  %v2037_v0 = vld [vmem:[#allocation6 + $0x4] sm:$0xf0] }
  0xbc   :  { %v1807_v30 = vor.u32 %v2050_v27, %v1804_v29  ;;  %1098 = vmatpush.bf16.msrb.mxu0 %v1795_v34  ;;  %v1754_v27 = vld [vmem:[#allocation6 + $0x10] sm:$0xf]  ;;  %v2038_v29 = vld [vmem:[#allocation6 + $0x14] sm:$0xf]  ;;  %v2057_v34 = vld [vmem:[#allocation6 + $0xa4] sm:$0xf0] }
  0xbd   :  { %v565_v39 = vadd.f32 %v564_v37, %v551_v36  ;;  %v539_v46 = vadd.f32 %v538_v43, %v525_v42  ;;  %v2067_v36 = vld [vmem:[#allocation6 + $0xf4] sm:$0xf0]  ;;  %v1799_v37 = vor.u32 %v2048_v33, %v1796_v59  ;;  %v1788_v42 = vld [vmem:[#allocation6 + $0x58] sm:$0xf0]  ;;  %1139 = vmatpush.bf16.msrb.mxu3 %v1871_v40  ;;  %v1759_v32 = vor.u32 %v2038_v29, %v1756_v31  ;;  %v1826_v33 = vld [vmem:[#allocation6 + $0xa0] sm:$0xf] }
  0xbe   :  { %1125 = vmatpush.bf16.msrb.mxu2 %v1807_v30  ;;  %v1867_v38 = vor.u32 %v2067_v36, %v1866_v35  ;;  %v1791_v44 = vor.u32 %v2046_v60, %v1788_v42  ;;  %v1755_v30 = vor.u32 %v2039_v28, %v1754_v27  ;;  %v2056_v59 = vld [vmem:[#allocation6 + $0xa4] sm:$0xf]  ;;  %v1827_v35 = vor.u32 %v2057_v34, %v1826_v33  ;;  %v1828_v36 = vld [vmem:[#allocation6 + $0xa8] sm:$0xf0]  ;;  %v1818_v60 = vld [vmem:[#allocation6 + $0x90] sm:$0xf] }
  0xbf   :  { %v625_v45 = vmax.f32 %v565_v39, 0.0  ;;  %v1786_v39 = vld [vmem:[#allocation6 + $0x50] sm:$0xf]  ;;  %v2036_v55 = vld [vmem:[#allocation6 + $0x4] sm:$0xf]  ;;  %v2079_v28 = vld [vmem:[#allocation7 + $0x58] sm:$0xff] }
  0xc0   :  { %1111 = vmatpush.bf16.msrb.mxu1 %v1867_v38  ;;  %v1787_v43 = vor.u32 %v2047_v41, %v1786_v39  ;;  %v1746_v38 = vld [vmem:[#allocation6] sm:$0xf]  ;;  %v1748_v40 = vld [vmem:[#allocation6 + $0x8] sm:$0xf0]  ;;  %v2055_v42 = vld [vmem:[#allocation6 + $0x94] sm:$0xf0] }
  0xc1   :  { %629 = vst [vmem:[%s2388_s10] sm:$0xff] %v625_v45  ;;  %v1747_v39 = vor.u32 %v2037_v0, %v1746_v38  ;;  %v1751_v41 = vor.u32 %v2036_v55, %v1748_v40  ;;  %v2070_v27 = vld [vmem:[#allocation7 + $0x10] sm:$0xff]  ;;  %v2069_v29 = vld [vmem:[#allocation7 + $0x8] sm:$0xff]  ;;  %v2068_v31 = vld [vmem:[#allocation7] sm:$0xff] }
  0xc2   :  { %v552_v52 = vpop.f32.mrf.mxu2  ;;  %1126 = vmatpush.bf16.msrb.mxu2 %v1799_v37  ;;  %1099 = vmatpush.bf16.msrb.mxu0 %v1787_v43  ;;  %v1831_v37 = vor.u32 %v2056_v59, %v1828_v36  ;;  %v2054_v43 = vld [vmem:[#allocation6 + $0x94] sm:$0xf]  ;;  %v2076_v33 = vld [vmem:[#allocation7 + $0x40] sm:$0xff] }
  0xc3   :  { %v553_v54 = vadd.f32 %v552_v52, %v539_v46  ;;  %v566_v56 = vpop.f32.mrf.mxu3  ;;  %v2065_v46 = vld [vmem:[#allocation6 + $0xe4] sm:$0xf0]  ;;  %v1863_v52 = vor.u32 %v2064_v47, %v1860_v49  ;;  %v1810_v47 = vld [vmem:[#allocation6 + $0x80] sm:$0xf]  ;;  %v2052_v49 = vld [vmem:[#allocation6 + $0x84] sm:$0xf] }
  0xc4   :  { %v931_v34 = vld [vmem:[%s2384_s6] sm:$0x3] }
  0xc5   :  { %v567_v62 = vadd.f32 %v566_v56, %v553_v54  ;;  %v1780_v54 = vld [vmem:[#allocation6 + $0x48] sm:$0xf0]  ;;  %v1850_v56 = vld [vmem:[#allocation6 + $0xd0] sm:$0xf]  ;;  %1140 = vmatpush.bf16.msrb.mxu3 %v1863_v52  ;;  %v1815_v52 = vor.u32 %v2052_v49, %v1812_v51  ;;  %v934_v55 = vperm.slane %v931_v34, 1 }
  0xc6   :  { %1127 = vmatpush.bf16.msrb.mxu2 %v1791_v44  ;;  %v1783_v63 = vor.u32 %v2044_v53, %v1780_v54  ;;  %v1851_v1 = vor.u32 %v2063_v58, %v1850_v56  ;;  %1100 = vmatpush.bf16.msrb.mxu0 %v1779_v57  ;;  %v1819_v44 = vor.u32 %v2055_v42, %v1818_v60  ;;  %v2075_v53 = vld [vmem:[#allocation7 + $0x38] sm:$0xff]  ;;  %v2074_v56 = vld [vmem:[#allocation7 + $0x30] sm:$0xff]  ;;  %v667_v57 = vld [vmem:[%s2382_s4] sm:$0x3] }
  0xc7   :  { %v627_v3 = vmax.f32 %v567_v62, 0.0  ;;  %v1852_v62 = vld [vmem:[#allocation6 + $0xd8] sm:$0xf0] }
  0xc8   :  { %v1855_v2 = vor.u32 %v2062_v61, %v1852_v62  ;;  %v2083_v54 = vld [vmem:[#allocation7 + $0x78] sm:$0xff]  ;;  %v669_v61 = vperm.slane %v667_v57, 0  ;;  %v2073_v62 = vld [vmem:[#allocation7 + $0x28] sm:$0xff] }
  0xc9   :  { %631 = vst [vmem:[%s2388_s10 + $0x10] sm:$0xff] %v627_v3  ;;  %v633_v4 = vpack.c.bf16 %v627_v3, %v625_v45  ;;  %v1858_v45 = vld [vmem:[#allocation6 + $0xe0] sm:$0xf]  ;;  %v1770_v3 = vld [vmem:[#allocation6 + $0x30] sm:$0xf] }
  0xca   :  { %v1859_v48 = vor.u32 %v2065_v46, %v1858_v45  ;;  %1128 = vmatpush.bf16.msrb.mxu2 %v1783_v63  ;;  %1141 = vmatpush.bf16.msrb.mxu3 %v1855_v2  ;;  %v1820_v45 = vld [vmem:[#allocation6 + $0x98] sm:$0xf0] }
  0xcb   :  { %841 = vmatmul.bf16.vlgmr.msra.gmra.mxu0 %v633_v4  ;;  %869 = vmatmul.bf16.vlgmr.msra.gmra.mxu2 %v633_v4  ;;  %v2043_v4 = vld [vmem:[#allocation6 + $0x34] sm:$0xf0]  ;;  %v1823_v46 = vor.u32 %v2054_v43, %v1820_v45 }
  0xcc   :  { %1112 = vmatpush.bf16.msrb.mxu1 %v1859_v48  ;;  %v2053_v48 = vld [vmem:[#allocation6 + $0x84] sm:$0xf0] }
  0xcd   :  { %v1811_v50 = vor.u32 %v2053_v48, %v1810_v47 }
  0xd0   :  { %1113 = vmatpush.bf16.msrb.mxu1 %v1851_v1 }
  0xd2   :  { %v578_v6 = vpop.f32.mrf.mxu0 }
  0xd3   :  { %v579_v7 = vadd.f32 %v578_v6, %v170_v5  ;;  %v592_v8 = vpop.f32.mrf.mxu1  ;;  %v1771_v6 = vor.u32 %v2043_v4, %v1770_v3  ;;  %v670_v3 = vperm.slane %v667_v57, 1  ;;  %v2092_v57 = vld [vmem:[%s2386_s8] ss:$0 sm:$0xff] }
  0xd5   :  { %v593_v9 = vadd.f32 %v592_v8, %v579_v7  ;;  %v1772_v7 = vld [vmem:[#allocation6 + $0x38] sm:$0xf0]  ;;  %1101 = vmatpush.bf16.msrb.mxu0 %v1771_v6 }
  0xda   :  { %v606_v10 = vpop.f32.mrf.mxu2  ;;  %v580_v14 = vpop.f32.mrf.mxu0 }
  0xdb   :  { %v607_v11 = vadd.f32 %v606_v10, %v593_v9  ;;  %v620_v13 = vpop.f32.mrf.mxu3  ;;  %v581_v16 = vadd.f32 %v580_v14, %v170_v5  ;;  %v594_v18 = vpop.f32.mrf.mxu1  ;;  %v2042_v5 = vld [vmem:[#allocation6 + $0x34] sm:$0xf]  ;;  %v1842_v9 = vld [vmem:[#allocation6 + $0xc0] sm:$0xf]  ;;  %v2061_v10 = vld [vmem:[#allocation6 + $0xc4] sm:$0xf0] }
  0xdc   :  { %v1775_v8 = vor.u32 %v2042_v5, %v1772_v7  ;;  %v1844_v14 = vld [vmem:[#allocation6 + $0xc8] sm:$0xf0] }
  0xdd   :  { %v621_v15 = vadd.f32 %v620_v13, %v607_v11  ;;  %v595_v19 = vadd.f32 %v594_v18, %v581_v16  ;;  %v2060_v11 = vld [vmem:[#allocation6 + $0xc4] sm:$0xf]  ;;  %v1843_v13 = vor.u32 %v2061_v10, %v1842_v9  ;;  %v1762_v16 = vld [vmem:[#allocation6 + $0x20] sm:$0xf] }
  0xde   :  { %1129 = vmatpush.bf16.msrb.mxu2 %v1775_v8  ;;  %v2040_v18 = vld [vmem:[#allocation6 + $0x24] sm:$0xf] }
  0xdf   :  { %v626_v17 = vmax.f32 %v621_v15, 0.0  ;;  %v1847_v15 = vor.u32 %v2060_v11, %v1844_v14  ;;  %1114 = vmatpush.bf16.msrb.mxu1 %v1843_v13 }
  0xe1   :  { %630 = vst [vmem:[%s2388_s10 + $0x8] sm:$0xff] %v626_v17  ;;  %1142 = vmatpush.bf16.msrb.mxu3 %v1847_v15 }
  0xe2   :  { %v608_v20 = vpop.f32.mrf.mxu2 }
  0xe3   :  { %v609_v21 = vadd.f32 %v608_v20, %v595_v19  ;;  %v622_v12 = vpop.f32.mrf.mxu3  ;;  %v1764_v20 = vld [vmem:[#allocation6 + $0x28] sm:$0xf0] }
  0xe5   :  { %v623_v22 = vadd.f32 %v622_v12, %v609_v21  ;;  %v1767_v21 = vor.u32 %v2040_v18, %v1764_v20  ;;  %v1834_v12 = vld [vmem:[#allocation6 + $0xb0] sm:$0xf] }
  0xe7   :  { %v628_v23 = vmax.f32 %v623_v22, 0.0  ;;  %v2059_v22 = vld [vmem:[#allocation6 + $0xb4] sm:$0xf0]  ;;  %1130 = vmatpush.bf16.msrb.mxu2 %v1767_v21 }
  0xe9   :  { %632 = vst [vmem:[%s2388_s10 + $0x18] sm:$0xff] %v628_v23  ;;  %v634_v24 = vpack.c.bf16 %v628_v23, %v626_v17  ;;  %v2041_v17 = vld [vmem:[#allocation6 + $0x24] sm:$0xf0]  ;;  %v2058_v23 = vld [vmem:[#allocation6 + $0xb4] sm:$0xf] }
  0xea   :  { %v1763_v19 = vor.u32 %v2041_v17, %v1762_v16  ;;  %v1839_v26 = vor.u32 %v2058_v23, %v1836_v25  ;;  %v2072_v23 = vld [vmem:[#allocation7 + $0x20] sm:$0xff]  ;;  %v2071_v25 = vld [vmem:[#allocation7 + $0x18] sm:$0xff] }
  0xeb   :  { %855 = vmatmul.bf16.vlgmr.msra.gmra.mxu1 %v634_v24  ;;  %883 = vmatmul.bf16.vlgmr.msra.gmra.mxu3 %v634_v24  ;;  %v1835_v24 = vor.u32 %v2059_v22, %v1834_v12  ;;  %v2082_v22 = vld [vmem:[#allocation7 + $0x70] sm:$0xff] }
  0xec   :  { %1102 = vmatpush.bf16.msrb.mxu0 %v1763_v19  ;;  %1143 = vmatpush.bf16.msrb.mxu3 %v1839_v26  ;;  %v2080_v26 = vld [vmem:[#allocation7 + $0x60] sm:$0xff] }
  0xed   :  { %1115 = vmatpush.bf16.msrb.mxu1 %v1835_v24  ;;  %1131 = vmatpush.bf16.msrb.mxu2 %v1759_v32  ;;  %v2081_v24 = vld [vmem:[#allocation7 + $0x68] sm:$0xff] }
  0xee   :  { %v2077_v32 = vld [vmem:[#allocation7 + $0x48] sm:$0xff] }
  0xf0   :  { %1103 = vmatpush.bf16.msrb.mxu0 %v1755_v30  ;;  %1144 = vmatpush.bf16.msrb.mxu3 %v1831_v37  ;;  %v2078_v30 = vld [vmem:[#allocation7 + $0x50] sm:$0xff] }
  0xf1   :  { %1116 = vmatpush.bf16.msrb.mxu1 %v1827_v35  ;;  %1132 = vmatpush.bf16.msrb.mxu2 %v1751_v41  ;;  %v933_v35 = vperm.slane %v931_v34, 0 }
  0xf4   :  { %1104 = vmatpush.bf16.msrb.mxu0 %v1747_v39  ;;  %1145 = vmatpush.bf16.msrb.mxu3 %v1823_v46 }
  0xf5   :  { %1117 = vmatpush.bf16.msrb.mxu1 %v1819_v44 }
  0xf8   :  { %1146 = vmatpush.bf16.msrb.mxu3 %v1815_v52  ;;  %1295 = vmatpush.bf16.msra.mxu0 %v2075_v53 }
  0xf9   :  { %1118 = vmatpush.bf16.msrb.mxu1 %v1811_v50 }
  0xfc   :  { %1296 = vmatpush.bf16.msra.mxu0 %v2074_v56 }
  0xfd   :  { %1309 = vmatpush.bf16.msra.mxu1 %v2083_v54 }
 0x100   :  { %1297 = vmatpush.bf16.msra.mxu0 %v2073_v62 }
 0x101   :  { %1310 = vmatpush.bf16.msra.mxu1 %v2082_v22 }
 0x104   :  { %1298 = vmatpush.bf16.msra.mxu0 %v2072_v23 }
 0x105   :  { %1311 = vmatpush.bf16.msra.mxu1 %v2081_v24 }
 0x108   :  { %1299 = vmatpush.bf16.msra.mxu0 %v2071_v25 }
 0x109   :  { %1312 = vmatpush.bf16.msra.mxu1 %v2080_v26 }
 0x10c   :  { %1300 = vmatpush.bf16.msra.mxu0 %v2070_v27 }
 0x10d   :  { %1313 = vmatpush.bf16.msra.mxu1 %v2079_v28 }
 0x110   :  { %1301 = vmatpush.bf16.msra.mxu0 %v2069_v29 }
 0x111   :  { %1314 = vmatpush.bf16.msra.mxu1 %v2078_v30 }
 0x114   :  { %1302 = vmatpush.bf16.msra.mxu0 %v2068_v31 }
 0x115   :  { %1315 = vmatpush.bf16.msra.mxu1 %v2077_v32 }
 0x119   :  { %1316 = vmatpush.bf16.msra.mxu1 %v2076_v33 }
 0x148   :  { %v842_v58 = vpop.f32.mrf.mxu0 }
 0x149   :  { %v843_v63 = vadd.f32 %v842_v58, %v669_v61 }
 0x14e   :  { %v870_v1 = vpop.f32.mrf.mxu2 }
 0x14f   :  { %v871_v7 = vadd.f32 %v870_v1, %v670_v3 }
 0x150   :  { %v844_v6 = vpop.f32.mrf.mxu0 }
 0x151   :  { %v845_v9 = vadd.f32 %v844_v6, %v669_v61 }
 0x156   :  { %v872_v15 = vpop.f32.mrf.mxu2 }
 0x157   :  { %v873_v17 = vadd.f32 %v872_v15, %v670_v3 }
 0x168   :  { %v856_v2 = vpop.f32.mrf.mxu1 }
 0x169   :  { %v857_v4 = vadd.f32 %v856_v2, %v843_v63 }
 0x16b   :  { %v889_v5 = vmax.f32 %v857_v4, 0.0 }
 0x16d   :  { %893 = vst [vmem:[%s2389_s11] sm:$0xff] %v889_v5 }
 0x16e   :  { %v884_v8 = vpop.f32.mrf.mxu3 }
 0x16f   :  { %v885_v10 = vadd.f32 %v884_v8, %v871_v7 }
 0x170   :  { %v858_v11 = vpop.f32.mrf.mxu1 }
 0x171   :  { %v890_v13 = vmax.f32 %v885_v10, 0.0  ;;  %v859_v14 = vadd.f32 %v858_v11, %v845_v9 }
 0x173   :  { %894 = vst [vmem:[%s2389_s11 + $0x8] sm:$0xff] %v890_v13  ;;  %v891_v16 = vmax.f32 %v859_v14, 0.0 }
 0x175   :  { %895 = vst [vmem:[%s2389_s11 + $0x10] sm:$0xff] %v891_v16  ;;  %v897_v18 = vpack.c.bf16 %v891_v16, %v889_v5 }
 0x176   :  { %v886_v19 = vpop.f32.mrf.mxu3 }
 0x177   :  { %v887_v20 = vadd.f32 %v886_v19, %v873_v17  ;;  %1105 = vmatmul.bf16.vlgmr.msrb.gmra.mxu0 %v897_v18  ;;  %1133 = vmatmul.bf16.vlgmr.msrb.gmra.mxu2 %v897_v18 }
 0x179   :  { %v892_v21 = vmax.f32 %v887_v20, 0.0 }
 0x17b   :  { %896 = vst [vmem:[%s2389_s11 + $0x18] sm:$0xff] %v892_v21  ;;  %v898_v12 = vpack.c.bf16 %v892_v21, %v890_v13 }
 0x17d   :  { %1119 = vmatmul.bf16.vlgmr.msrb.gmra.mxu1 %v898_v12  ;;  %1147 = vmatmul.bf16.vlgmr.msrb.gmra.mxu3 %v898_v12 }
 0x1f4   :  { %v1106_v59 = vpop.f32.mrf.mxu0 }
 0x1f5   :  { %v1107_v36 = vadd.f32 %v1106_v59, %v933_v35 }
 0x1fa   :  { %v1120_v37 = vpop.f32.mrf.mxu1  ;;  %v1134_v38 = vpop.f32.mrf.mxu2 }
 0x1fb   :  { %v1121_v0 = vadd.f32 %v1120_v37, %v1107_v36  ;;  %v1135_v41 = vadd.f32 %v1134_v38, %v934_v55 }
 0x1fc   :  { %v1108_v40 = vpop.f32.mrf.mxu0 }
 0x1fd   :  { %v1153_v39 = vmax.f32 %v1121_v0, 0.0  ;;  %v1109_v42 = vadd.f32 %v1108_v40, %v933_v35 }
 0x1ff   :  { %1157 = vst [vmem:[%s2390_s12] sm:$0xff] %v1153_v39 }
 0x200   :  { %v1148_v60 = vpop.f32.mrf.mxu3 }
 0x201   :  { %v1149_v43 = vadd.f32 %v1148_v60, %v1135_v41 }
 0x202   :  { %v1122_v44 = vpop.f32.mrf.mxu1  ;;  %v1136_v47 = vpop.f32.mrf.mxu2 }
 0x203   :  { %v1154_v45 = vmax.f32 %v1149_v43, 0.0  ;;  %v1123_v46 = vadd.f32 %v1122_v44, %v1109_v42  ;;  %v1137_v50 = vadd.f32 %v1136_v47, %v934_v55 }
 0x205   :  { %1158 = vst [vmem:[%s2390_s12 + $0x8] sm:$0xff] %v1154_v45  ;;  %v1155_v48 = vmax.f32 %v1123_v46, 0.0 }
 0x207   :  { %1159 = vst [vmem:[%s2390_s12 + $0x10] sm:$0xff] %v1155_v48  ;;  %v1161_v49 = vpack.c.bf16 %v1155_v48, %v1153_v39 }
 0x208   :  { %v1150_v51 = vpop.f32.mrf.mxu3 }
 0x209   :  { %v1151_v52 = vadd.f32 %v1150_v51, %v1137_v50  ;;  %1303 = vmatmul.bf16.vlgmr.msra.gmra.mxu0 %v1161_v49 }
 0x20b   :  { %v1156_v53 = vmax.f32 %v1151_v52, 0.0 }
 0x20d   :  { %1160 = vst [vmem:[%s2390_s12 + $0x18] sm:$0xff] %v1156_v53  ;;  %v1162_v54 = vpack.c.bf16 %v1156_v53, %v1154_v45 }
 0x20f   :  { %1317 = vmatmul.bf16.vlgmr.msra.gmra.mxu1 %v1162_v54 }
 0x286   :  { %v1304_v56 = vpop.f32.mrf.mxu0 }
 0x287   :  { %v1305_v58 = vadd.f32 %v2092_v57, %v1304_v56 }
 0x28c   :  { %v1318_v61 = vpop.f32.mrf.mxu1 }
 0x28d   :  { %v1319_v62 = vadd.f32 %v1318_v61, %v1305_v58 }
 0x28e   :  { %v1306_v63 = vpop.f32.mrf.mxu0 }
 0x28f   :  { %1323 = vst [vmem:[%s2387_s9] sm:$0xff] %v1319_v62  ;;  %v1307_v1 = vadd.f32 %v2092_v57, %v1306_v63 }
 0x294   :  { %v1320_v2 = vpop.f32.mrf.mxu1 }
 0x295   :  { %v1321_v3 = vadd.f32 %v1320_v2, %v1307_v1 }
 0x297   :  { %1324 = vst [vmem:[%s2387_s9 + $0x8] sm:$0xff] %v1321_v3 }
 0x298   :  { %1341 = vsyncpa [#allocation3], 1 }
 0x299   :  { %1342 = vsyncpa [#allocation5], 1 }
 0x29a   :  { %1343 = vsyncpa [#allocation8], 1 }

</bundles_post_ra>
